<compile_context>
chip_gen: v7x
topology: tpu7x:2x2x1
jax: 0.10.0
libtpu: 0.0.40
codegen_flags: <defaults>
</compile_context>

<pallas_src>
import functools

import jax
import jax.numpy as jnp
from jax.experimental import pallas as pl
from jax.experimental.pallas import tpu as pltpu


def _round_up(x, m):
    return ((x + m - 1) // m) * m


def _leaky_relu(x, slope=0.01):
    # max(x, slope*x) == leaky_relu for slope in (0, 1); matches torch default 0.01.
    return jnp.maximum(x, slope * x)


def policy_net_kernel(x_ref,
                      w1_ref, b1_ref,
                      w2_ref, b2_ref,
                      w3_ref, b3_ref,
                      w4_ref, b4_ref,
                      out_ref):
    # linear1 + leaky_relu   (input_size -> 64)   bf16 MXU operands, f32 accumulate
    x = x_ref[...]  # already bf16 (cast + DMA'd as bf16 in the wrapper)
    h = jnp.dot(x, w1_ref[...], preferred_element_type=jnp.float32) + b1_ref[...]
    h = _leaky_relu(h)

    # linear2 + leaky_relu   (64 -> 128)
    h = jnp.dot(h.astype(jnp.bfloat16), w2_ref[...],
                preferred_element_type=jnp.float32) + b2_ref[...]
    h = _leaky_relu(h)

    # linear3 + leaky_relu   (128 -> 64)
    h = jnp.dot(h.astype(jnp.bfloat16), w3_ref[...],
                preferred_element_type=jnp.float32) + b3_ref[...]
    h = _leaky_relu(h)

    # head                   (64 -> num_actions padded to 128, padded bias = -1e30)
    logits = jnp.dot(h.astype(jnp.bfloat16), w4_ref[...],
                     preferred_element_type=jnp.float32) + b4_ref[...]

    # f32 softmax over the action (lane) axis; padded columns -> exp(-huge) == 0.
    m = jnp.max(logits, axis=-1, keepdims=True)
    e = jnp.exp(logits - m)
    denom = jnp.sum(e, axis=-1, keepdims=True)
    # Exact divide (cost negligible); cast to bf16 only on the final store.
    out_ref[...] = (e / denom).astype(out_ref.dtype)


def prepare_params(params):
    """Pre-cast weights to bf16 (MXU operands) and pad the head to 128 lanes.

    Call once per parameter set (cached by policy_network_forward); every forward
    call then reuses the prepared buffers with zero re-cast/re-pad dispatches.
    """
    num_actions = params["w4"].shape[1]
    a_pad = _round_up(max(num_actions, 128), 128)

    prepared = {}
    for i in (1, 2, 3):
        prepared[f"w{i}"] = params[f"w{i}"].astype(jnp.bfloat16)
        prepared[f"b{i}"] = params[f"b{i}"].astype(jnp.float32)

    w4 = jnp.zeros((params["w4"].shape[0], a_pad), jnp.bfloat16)
    w4 = w4.at[:, :num_actions].set(params["w4"].astype(jnp.bfloat16))
    # Padded logits must vanish under softmax: give them a huge negative bias.
    # (Safe in f32/bf16; do NOT move the logits path to float16.)
    b4 = jnp.full((1, a_pad), -1e30, jnp.float32)
    b4 = b4.at[:, :num_actions].set(params["b4"].astype(jnp.float32))
    prepared["w4"] = w4
    prepared["b4"] = b4
    return prepared, num_actions, a_pad


def _choose_tile(batch):
    """Batch tile: big tiles amortize per-step overhead; >=2 tiles for large
    batches so the "parallel" axis can shard across v7x's two TensorCores."""
    padded16 = _round_up(batch, 16)
    if padded16 <= 512:
        tb = padded16                        # single tile
    elif padded16 <= 2048:
        tb = _round_up((padded16 + 1) // 2, 16)   # two tiles
    else:
        tb = 1024                            # >=3 tiles of 1024 rows
    padded_batch = _round_up(padded16, tb)
    return tb, padded_batch


@functools.partial(jax.jit, static_argnames=("a_pad",))
def _policy_forward_padded(x, p, a_pad):
    batch, input_size = x.shape
    TB, padded_batch = _choose_tile(batch)
    n_tiles = padded_batch // TB

    # bf16 input DMA (and deletes the per-tile VPU cast in the kernel).
    x = x.astype(jnp.bfloat16)
    if padded_batch != batch:
        x = jnp.pad(x, ((0, padded_batch - batch), (0, 0)))

    def row_map(i):
        return (i, 0)

    def resident(i):
        return (0, 0)

    h1, h2, h3 = 64, 128, 64
    flops = 2 * padded_batch * (input_size * h1 + h1 * h2 + h2 * h3 + h3 * a_pad)
    weight_bytes = sum(int(p[k].size) * p[k].dtype.itemsize
                       for k in ("w1", "b1", "w2", "b2", "w3", "b3", "w4", "b4"))
    bytes_accessed = (x.size * 2                    # bf16 input
                      + weight_bytes
                      + padded_batch * a_pad * 2)   # bf16 output
    transcendentals = padded_batch * a_pad          # exp

    # Double-buffered bf16 x/out tiles + resident weights; generous headroom.
    vmem_limit = min(32 * 1024 * 1024,
                     max(8 * 1024 * 1024,
                         8 * TB * (input_size + a_pad) + 4 * weight_bytes))

    out = pl.pallas_call(
        policy_net_kernel,
        out_shape=jax.ShapeDtypeStruct((padded_batch, a_pad), jnp.bfloat16),
        grid=(n_tiles,),
        in_specs=[
            pl.BlockSpec((TB, input_size), row_map),          # x: pipelined per tile
            pl.BlockSpec(p["w1"].shape, resident),            # weights/biases: resident
            pl.BlockSpec(p["b1"].shape, resident),
            pl.BlockSpec(p["w2"].shape, resident),
            pl.BlockSpec(p["b2"].shape, resident),
            pl.BlockSpec(p["w3"].shape, resident),
            pl.BlockSpec(p["b3"].shape, resident),
            pl.BlockSpec(p["w4"].shape, resident),
            pl.BlockSpec(p["b4"].shape, resident),
        ],
        out_specs=pl.BlockSpec((TB, a_pad), row_map),
        compiler_params=pltpu.CompilerParams(
            dimension_semantics=("parallel",),                # megacore on v7x
            vmem_limit_bytes=int(vmem_limit)),
        cost_estimate=pl.CostEstimate(
            flops=flops,
            transcendentals=transcendentals,
            bytes_accessed=bytes_accessed),
    )(x, p["w1"], p["b1"], p["w2"], p["b2"], p["w3"], p["b3"], p["w4"], p["b4"])

    return out


# ---- user-facing wrappers ---------------------------------------------------

_PREP_CACHE = {}


def _get_prepared(params):
    key = id(params)
    entry = _PREP_CACHE.get(key)
    if entry is None:
        entry = prepare_params(params)
        _PREP_CACHE[key] = entry
    return entry


def policy_network_forward_padded(x, params):
    """Hot-path entry: returns the padded (padded_batch, 128) bf16 softmax buffer
    (padded action columns are exactly 0) with no post-kernel slice."""
    prepared, _num_actions, a_pad = _get_prepared(params)
    return _policy_forward_padded(x, prepared, a_pad)


def policy_network_forward(x, params):
    """PyTorch-shaped API: x (batch, input_size) f32 -> (batch, num_actions) probs.

    Convenience wrapper; the trailing slice re-reads the padded buffer, so prefer
    policy_network_forward_padded (or consume the padded buffer directly) on the
    hot path for large batches.
    """
    prepared, num_actions, a_pad = _get_prepared(params)
    out = _policy_forward_padded(x, prepared, a_pad)
    return out[:x.shape[0], :num_actions]


def init_params(key, input_size, num_actions):
    """Deterministic init mimicking torch.nn.Linear (uniform +/- 1/sqrt(fan_in))."""
    dims = [(input_size, 64), (64, 128), (128, 64), (64, num_actions)]
    params = {}
    for i, (fan_in, fan_out) in enumerate(dims, start=1):
        key, kw, kb = jax.random.split(key, 3)
        bound = 1.0 / (fan_in ** 0.5)
        params[f"w{i}"] = jax.random.uniform(
            kw, (fan_in, fan_out), jnp.float32, -bound, bound)
        params[f"b{i}"] = jax.random.uniform(
            kb, (1, fan_out), jnp.float32, -bound, bound)
    return params


def policy_network_reference(x, params):
    """Pure-JAX f32 reference of the PyTorch forward()."""
    h = x
    for i in (1, 2, 3):
        h = h @ params[f"w{i}"] + params[f"b{i}"]
        h = jnp.where(h > 0, h, 0.01 * h)
    logits = h @ params["w4"] + params["b4"]
    return jax.nn.softmax(logits, axis=1)


if __name__ == "__main__":
    key = jax.random.PRNGKey(0)
    batch = 8
    input_size = 16
    num_actions = 10

    kx, kp = jax.random.split(key)
    x = jax.random.normal(kx, (batch, input_size), jnp.float32)
    params = init_params(kp, input_size, num_actions)

    out = policy_network_forward(x, params)
    out = jax.block_until_ready(out)

    assert out.shape == (batch, num_actions)
    out_f32 = out.astype(jnp.float32)
    # rows sum to 1 (bf16 output rounding -> loosened tolerance)
    assert bool(jnp.allclose(jnp.sum(out_f32, axis=1), 1.0, atol=2e-2))
    # matches the f32 reference within bf16 tolerance
    ref = policy_network_reference(x, params)
    assert bool(jnp.allclose(out_f32, ref, atol=3e-2))

    print("KERNEL_OK")
</pallas_src>

<mosaic_0001>
module attributes {stable_mosaic.version = 11 : i64} {
  func.func @policy_net_kernel(%arg0: i32, %arg1: memref<16x16xbf16, #tpu.memory_space<vmem>>, %arg2: memref<16x64xbf16, #tpu.memory_space<vmem>>, %arg3: memref<1x64xf32, #tpu.memory_space<vmem>>, %arg4: memref<64x128xbf16, #tpu.memory_space<vmem>>, %arg5: memref<1x128xf32, #tpu.memory_space<vmem>>, %arg6: memref<128x64xbf16, #tpu.memory_space<vmem>>, %arg7: memref<1x64xf32, #tpu.memory_space<vmem>>, %arg8: memref<64x128xbf16, #tpu.memory_space<vmem>>, %arg9: memref<1x128xf32, #tpu.memory_space<vmem>>, %arg10: memref<16x128xbf16, #tpu.memory_space<vmem>>) attributes {dimension_semantics = [#tpu.dimension_semantics<parallel>], iteration_bounds = array<i64: 1>, scalar_prefetch = 0 : i64, scratch_operands = 0 : i64, tpu.core_type = #tpu.core_type<tc>, window_params = [{transform_indices = @transform_0, window_bounds = array<i64: 16, 16>}, {pipeline_mode = #tpu.pipeline_mode<synchronous>, transform_indices = @transform_1, window_bounds = array<i64: 16, 64>}, {pipeline_mode = #tpu.pipeline_mode<synchronous>, transform_indices = @transform_2, window_bounds = array<i64: 1, 64>}, {pipeline_mode = #tpu.pipeline_mode<synchronous>, transform_indices = @transform_3, window_bounds = array<i64: 64, 128>}, {pipeline_mode = #tpu.pipeline_mode<synchronous>, transform_indices = @transform_4, window_bounds = array<i64: 1, 128>}, {pipeline_mode = #tpu.pipeline_mode<synchronous>, transform_indices = @transform_5, window_bounds = array<i64: 128, 64>}, {pipeline_mode = #tpu.pipeline_mode<synchronous>, transform_indices = @transform_6, window_bounds = array<i64: 1, 64>}, {pipeline_mode = #tpu.pipeline_mode<synchronous>, transform_indices = @transform_7, window_bounds = array<i64: 64, 128>}, {pipeline_mode = #tpu.pipeline_mode<synchronous>, transform_indices = @transform_8, window_bounds = array<i64: 1, 128>}, {transform_indices = @transform_9, window_bounds = array<i64: 16, 128>}]} {
    %c0 = arith.constant 0 : index
    %c0_0 = arith.constant 0 : index
    %0 = vector.load %arg1[%c0, %c0_0] : memref<16x16xbf16, #tpu.memory_space<vmem>>, vector<16x16xbf16>
    %c0_1 = arith.constant 0 : index
    %c0_2 = arith.constant 0 : index
    %1 = vector.load %arg2[%c0_1, %c0_2] : memref<16x64xbf16, #tpu.memory_space<vmem>>, vector<16x64xbf16>
    %cst = arith.constant dense<0.000000e+00> : vector<16x64xf32>
    %2 = tpu.matmul %0, %1, %cst {dimension_numbers = #tpu.dot_dimension_numbers<[1], [0], [0], [1], [0, 0, 1, 1], [], []>} : vector<16x16xbf16>, vector<16x64xbf16>, vector<16x64xf32> -> vector<16x64xf32>
    %c0_3 = arith.constant 0 : index
    %c0_4 = arith.constant 0 : index
    %3 = vector.load %arg3[%c0_3, %c0_4] : memref<1x64xf32, #tpu.memory_space<vmem>>, vector<1x64xf32>
    %4 = vector.broadcast %3 : vector<1x64xf32> to vector<16x64xf32>
    %5 = arith.addf %2, %4 : vector<16x64xf32>
    %cst_5 = arith.constant 0.00999999977 : f32
    %6 = vector.broadcast %cst_5 : f32 to vector<16x64xf32>
    %7 = arith.mulf %6, %5 : vector<16x64xf32>
    %8 = arith.maximumf %5, %7 : vector<16x64xf32>
    %9 = arith.truncf %8 : vector<16x64xf32> to vector<16x64xbf16>
    %c0_6 = arith.constant 0 : index
    %c0_7 = arith.constant 0 : index
    %10 = vector.load %arg4[%c0_6, %c0_7] : memref<64x128xbf16, #tpu.memory_space<vmem>>, vector<64x128xbf16>
    %cst_8 = arith.constant dense<0.000000e+00> : vector<16x128xf32>
    %11 = tpu.matmul %9, %10, %cst_8 {dimension_numbers = #tpu.dot_dimension_numbers<[1], [0], [0], [1], [0, 0, 1, 1], [], []>} : vector<16x64xbf16>, vector<64x128xbf16>, vector<16x128xf32> -> vector<16x128xf32>
    %c0_9 = arith.constant 0 : index
    %c0_10 = arith.constant 0 : index
    %12 = vector.load %arg5[%c0_9, %c0_10] : memref<1x128xf32, #tpu.memory_space<vmem>>, vector<1x128xf32>
    %13 = vector.broadcast %12 : vector<1x128xf32> to vector<16x128xf32>
    %14 = arith.addf %11, %13 : vector<16x128xf32>
    %cst_11 = arith.constant 0.00999999977 : f32
    %15 = vector.broadcast %cst_11 : f32 to vector<16x128xf32>
    %16 = arith.mulf %15, %14 : vector<16x128xf32>
    %17 = arith.maximumf %14, %16 : vector<16x128xf32>
    %18 = arith.truncf %17 : vector<16x128xf32> to vector<16x128xbf16>
    %c0_12 = arith.constant 0 : index
    %c0_13 = arith.constant 0 : index
    %19 = vector.load %arg6[%c0_12, %c0_13] : memref<128x64xbf16, #tpu.memory_space<vmem>>, vector<128x64xbf16>
    %cst_14 = arith.constant dense<0.000000e+00> : vector<16x64xf32>
    %20 = tpu.matmul %18, %19, %cst_14 {dimension_numbers = #tpu.dot_dimension_numbers<[1], [0], [0], [1], [0, 0, 1, 1], [], []>} : vector<16x128xbf16>, vector<128x64xbf16>, vector<16x64xf32> -> vector<16x64xf32>
    %c0_15 = arith.constant 0 : index
    %c0_16 = arith.constant 0 : index
    %21 = vector.load %arg7[%c0_15, %c0_16] : memref<1x64xf32, #tpu.memory_space<vmem>>, vector<1x64xf32>
    %22 = vector.broadcast %21 : vector<1x64xf32> to vector<16x64xf32>
    %23 = arith.addf %20, %22 : vector<16x64xf32>
    %cst_17 = arith.constant 0.00999999977 : f32
    %24 = vector.broadcast %cst_17 : f32 to vector<16x64xf32>
    %25 = arith.mulf %24, %23 : vector<16x64xf32>
    %26 = arith.maximumf %23, %25 : vector<16x64xf32>
    %27 = arith.truncf %26 : vector<16x64xf32> to vector<16x64xbf16>
    %c0_18 = arith.constant 0 : index
    %c0_19 = arith.constant 0 : index
    %28 = vector.load %arg8[%c0_18, %c0_19] : memref<64x128xbf16, #tpu.memory_space<vmem>>, vector<64x128xbf16>
    %cst_20 = arith.constant dense<0.000000e+00> : vector<16x128xf32>
    %29 = tpu.matmul %27, %28, %cst_20 {dimension_numbers = #tpu.dot_dimension_numbers<[1], [0], [0], [1], [0, 0, 1, 1], [], []>} : vector<16x64xbf16>, vector<64x128xbf16>, vector<16x128xf32> -> vector<16x128xf32>
    %c0_21 = arith.constant 0 : index
    %c0_22 = arith.constant 0 : index
    %30 = vector.load %arg9[%c0_21, %c0_22] : memref<1x128xf32, #tpu.memory_space<vmem>>, vector<1x128xf32>
    %31 = vector.broadcast %30 : vector<1x128xf32> to vector<16x128xf32>
    %32 = arith.addf %29, %31 : vector<16x128xf32>
    %cst_23 = arith.constant dense<0xFF800000> : vector<16xf32>
    %33 = vector.multi_reduction <maximumf>, %32, %cst_23 [1] : vector<16x128xf32> to vector<16xf32>
    %34 = vector.shape_cast %33 : vector<16xf32> to vector<16x1xf32>
    %35 = vector.broadcast %34 : vector<16x1xf32> to vector<16x128xf32>
    %36 = arith.subf %32, %35 : vector<16x128xf32>
    %37 = math.exp %36 : vector<16x128xf32>
    %cst_24 = arith.constant dense<0.000000e+00> : vector<16xf32>
    %38 = vector.multi_reduction <add>, %37, %cst_24 [1] : vector<16x128xf32> to vector<16xf32>
    %39 = vector.shape_cast %38 : vector<16xf32> to vector<16x1xf32>
    %40 = vector.broadcast %39 : vector<16x1xf32> to vector<16x128xf32>
    %41 = arith.divf %37, %40 : vector<16x128xf32>
    %42 = arith.truncf %41 : vector<16x128xf32> to vector<16x128xbf16>
    %c0_25 = arith.constant 0 : index
    %c0_26 = arith.constant 0 : index
    %43 = vector.load %arg10[%c0_25, %c0_26] : memref<16x128xbf16, #tpu.memory_space<vmem>>, vector<16x128xbf16>
    tpu.vector_store %arg10[%c0_25, %c0_26], %42 {strides = array<i32>} : memref<16x128xbf16, #tpu.memory_space<vmem>>, vector<16x128xbf16>,
    return
  }
  func.func @transform_0(%arg0: i32) -> (i32, i32) {
    %c0_i32 = arith.constant 0 : i32
    %c0_i32_0 = arith.constant 0 : i32
    return %arg0, %c0_i32 : i32, i32
  }
  func.func @transform_1(%arg0: i32) -> (i32, i32) {
    %c0_i32 = arith.constant 0 : i32
    %c0_i32_0 = arith.constant 0 : i32
    %c0_i32_1 = arith.constant 0 : i32
    return %c0_i32, %c0_i32_0 : i32, i32
  }
  func.func @transform_2(%arg0: i32) -> (i32, i32) {
    %c0_i32 = arith.constant 0 : i32
    %c0_i32_0 = arith.constant 0 : i32
    %c0_i32_1 = arith.constant 0 : i32
    return %c0_i32, %c0_i32_0 : i32, i32
  }
  func.func @transform_3(%arg0: i32) -> (i32, i32) {
    %c0_i32 = arith.constant 0 : i32
    %c0_i32_0 = arith.constant 0 : i32
    %c0_i32_1 = arith.constant 0 : i32
    return %c0_i32, %c0_i32_0 : i32, i32
  }
  func.func @transform_4(%arg0: i32) -> (i32, i32) {
    %c0_i32 = arith.constant 0 : i32
    %c0_i32_0 = arith.constant 0 : i32
    %c0_i32_1 = arith.constant 0 : i32
    return %c0_i32, %c0_i32_0 : i32, i32
  }
  func.func @transform_5(%arg0: i32) -> (i32, i32) {
    %c0_i32 = arith.constant 0 : i32
    %c0_i32_0 = arith.constant 0 : i32
    %c0_i32_1 = arith.constant 0 : i32
    return %c0_i32, %c0_i32_0 : i32, i32
  }
  func.func @transform_6(%arg0: i32) -> (i32, i32) {
    %c0_i32 = arith.constant 0 : i32
    %c0_i32_0 = arith.constant 0 : i32
    %c0_i32_1 = arith.constant 0 : i32
    return %c0_i32, %c0_i32_0 : i32, i32
  }
  func.func @transform_7(%arg0: i32) -> (i32, i32) {
    %c0_i32 = arith.constant 0 : i32
    %c0_i32_0 = arith.constant 0 : i32
    %c0_i32_1 = arith.constant 0 : i32
    return %c0_i32, %c0_i32_0 : i32, i32
  }
  func.func @transform_8(%arg0: i32) -> (i32, i32) {
    %c0_i32 = arith.constant 0 : i32
    %c0_i32_0 = arith.constant 0 : i32
    %c0_i32_1 = arith.constant 0 : i32
    return %c0_i32, %c0_i32_0 : i32, i32
  }
  func.func @transform_9(%arg0: i32) -> (i32, i32) {
    %c0_i32 = arith.constant 0 : i32
    %c0_i32_0 = arith.constant 0 : i32
    return %arg0, %c0_i32 : i32, i32
  }
}

</mosaic_0001>

<bundles_post_ra>
// kernel: _policy_forward_padded.1
= control target key start
LH: loop header
LB: loop body
LE: loop exit
PB: predicated region body
PF: predicated region fallthrough
CT: control target
= control target key end

     0   :  { %v599_v1 = vmov 0.0   ;;  %vm600_vm0 = vmmov 0   ;;  %vm56_vm1 = vcmask 130048   ;;  %s759_s0 = inlined_call_operand.vmem [shape: bf16[16,16], index: 0, kind: input, shape index: {}]   ;;  %s760_s1 = inlined_call_operand.vmem [shape: bf16[16,64], index: 1, kind: input, shape index: {}]   ;;  %s761_s2 = inlined_call_operand.vmem [shape: f32[1,64], index: 2, kind: input, shape index: {}]   ;;  %s762_s3 = inlined_call_operand.vmem [shape: bf16[64,128], index: 3, kind: input, shape index: {}]   ;;  %s763_s4 = inlined_call_operand.vmem [shape: f32[1,128], index: 4, kind: input, shape index: {}]   ;;  %s764_s5 = inlined_call_operand.vmem [shape: bf16[128,64], index: 5, kind: input, shape index: {}]   ;;  %s765_s6 = inlined_call_operand.vmem [shape: f32[1,64], index: 6, kind: input, shape index: {}]   ;;  %s766_s7 = inlined_call_operand.vmem [shape: bf16[64,128], index: 7, kind: input, shape index: {}]   ;;  %s767_s8 = inlined_call_operand.vmem [shape: f32[1,128], index: 8, kind: input, shape index: {}]   ;;  %s768_s9 = inlined_call_operand.hbm [shape: bf16[16,128], index: 9, kind: output, shape index: {}]  }
   0x1   :  { %v549_v0 = vld [vmem:[%s760_s1] sm:$0xff]   ;;  %494 = vmatprep.subr.bf16.mxu0 %v599_v1  ;;  %500 = vmatprep.subr.bf16.mxu1 %v599_v1 }
   0x2   :  { %v550_v2 = vld [vmem:[%s759_s0] sm:$0xff]   ;;  %495 = vmatpush3.bf16.msra.mxu0 %v549_v0  ;;  %496 = vmatprep.mubr.msk.bf16.mxu0 %vm600_vm0, %v599_v1 }
   0x3   :  { %v551_v3 = vld [vmem:[%s762_s3] sm:$0xff]   ;;  %508 = vmatprep.mubr.msk.bf16.mxu1 %vm600_vm0, %v599_v1  ;;  %512 = vmatprep.subr.bf16.mxu0 %v599_v1 }
   0x4   :  { %501 = vmatpush3.bf16.msra.mxu1 %v551_v3 }
   0x5   :  { %497 = vmatmul.mubr.msk.bf16.vlgmr.msra.gmra.mrb[0].mxu0 %vm56_vm1, %v550_v2  ;;  %502 = vmatprep.subr.bf16.mxu1 %v599_v1 }
   0x6   :  { %528 = vmatprep.mubr.msk.bf16.mxu0 %vm600_vm0, %v599_v1 }
   0x7   :  { %14 = vsyncpa [#allocation3], 0  ;;  %v552_v4 = vld [vmem:[%s762_s3 + $0x8] sm:$0xff]   ;;  %v553_v5 = vld [vmem:[%s762_s3 + $0x10] sm:$0xff]   ;;  %vm145_vm2 = vcmask 523264  }
   0x8   :  { %503 = vmatpush3.bf16.msra.mxu1 %v552_v4  ;;  %v554_v6 = vld [vmem:[%s762_s3 + $0x18] sm:$0xff]   ;;  %v555_v7 = vld [vmem:[%s764_s5] sm:$0xff]   ;;  %v556_v8 = vld [vmem:[%s764_s5 + $0x8] sm:$0xff]  }
   0x9   :  { %504 = vmatprep.subr.bf16.mxu1 %v599_v1  ;;  %513 = vmatpush3.bf16.msra.mxu0 %v555_v7  ;;  %v557_v9 = vld [vmem:[%s764_s5 + $0x10] sm:$0xff]   ;;  %v558_v10 = vld [vmem:[%s764_s5 + $0x18] sm:$0xff]   ;;  %v559_v11 = vld [vmem:[%s764_s5 + $0x20] sm:$0xff]  }
   0xa   :  { %514 = vmatprep.subr.bf16.mxu0 %v599_v1  ;;  %v439_v12 = vld [vmem:[%s761_s2] ss:$0 sm:$0xff]  ;;  %v560_v24 = vld [vmem:[%s764_s5 + $0x28] sm:$0xff]   ;;  %v561_v25 = vld [vmem:[%s764_s5 + $0x30] sm:$0xff]  }
   0xb   :  { %v562_v26 = vld [vmem:[%s764_s5 + $0x38] sm:$0xff]   ;;  %v563_v27 = vld [vmem:[%s766_s7] sm:$0xff]   ;;  %v564_v40 = vld [vmem:[%s766_s7 + $0x8] sm:$0xff]  }
   0xc   :  { %505 = vmatpush3.bf16.msra.mxu1 %v553_v5  ;;  %v443_v28 = vld [vmem:[%s763_s4] ss:$0 sm:$0xff]  ;;  %v565_v41 = vld [vmem:[%s766_s7 + $0x10] sm:$0xff]   ;;  %v566_v42 = vld [vmem:[%s766_s7 + $0x18] sm:$0xff]  }
   0xd   :  { %506 = vmatprep.subr.bf16.mxu1 %v599_v1  ;;  %515 = vmatpush3.bf16.msra.mxu0 %v556_v8  ;;  %v449_v43 = vld [vmem:[%s765_s6] ss:$0 sm:$0xff]  ;;  %s601_s6 = smov [#allocation2]  }
   0xe   :  { %516 = vmatprep.subr.bf16.mxu0 %v599_v1  ;;  %v458_v55 = vld [vmem:[%s767_s8] ss:$0 sm:$0xff]  ;;  %s428_s8 = sshll.u32 %s601_s6, 4  ;;  %s429_s8 = int_to_ptr.vmem [resolvable:$true] %s428_s8 }
   0xf   :  { %s575_s23 = scalar_lea.vmem %s429_s8, 128  ;;  %p580_p1 = scmp.lt.s32.totalorder %s429_s8, %s429_s8 }
  0x10   :  { %507 = vmatpush3.bf16.msra.mxu1 %v554_v6  ;;  %p576_p0 = scmp.ne.s32.totalorder %s429_s8, %s575_s23  ;;  %p581_p2 = scmp.lt.s32.totalorder %s575_s23, %s575_s23 }
  0x11   :  { %532 = vmatprep.subr.bf16.mxu1 %v599_v1  ;;  %517 = vmatpush3.bf16.msra.mxu0 %v557_v9 }
  0x12   :  { %518 = vmatprep.subr.bf16.mxu0 %v599_v1  ;;  %p582_p3 = por %p581_p2, %p580_p1 }
  0x14   :  { %p583_p4 = pnand %p582_p3, %p576_p0 }
  0x15   :  { %519 = vmatpush3.bf16.msra.mxu0 %v558_v10 }
  0x16   :  { %520 = vmatprep.subr.bf16.mxu0 %v599_v1 }
  0x19   :  { %521 = vmatpush3.bf16.msra.mxu0 %v559_v11 }
  0x1a   :  { %522 = vmatprep.subr.bf16.mxu0 %v599_v1 }
  0x1d   :  { %523 = vmatpush3.bf16.msra.mxu0 %v560_v24 }
  0x1e   :  { %524 = vmatprep.subr.bf16.mxu0 %v599_v1 }
  0x21   :  { %525 = vmatpush3.bf16.msra.mxu0 %v561_v25 }
  0x22   :  { %526 = vmatprep.subr.bf16.mxu0 %v599_v1 }
  0x25   :  { %527 = vmatpush3.bf16.msra.mxu0 %v562_v26 }
  0xd8   :  { %v94_v13 = vpop.f32.mrb[0].mxu0 }
  0xd9   :  { %v95_v14 = vadd.f32 %v439_v12, %v94_v13  ;;  %v498_v15 = vpop.f32.mrb[1].mxu0 }
  0xda   :  { %v97_v16 = vpop.f32.mrb[2].mxu0 }
  0xdb   :  { %v101_v17 = vmul.f32 0.01, %v95_v14  ;;  %v98_v18 = vadd.f32 %v439_v12, %v97_v16  ;;  %v499_v19 = vpop.f32.mrb[3].mxu0 }
  0xdd   :  { %v102_v20 = vmul.f32 0.01, %v98_v18  ;;  %v103_v21 = vmax.f32 %v95_v14, %v101_v17 }
  0xdf   :  { %v104_v22 = vmax.f32 %v98_v18, %v102_v20 }
  0xe1   :  { %v105_v23 = vpack.c.bf16 %v104_v22, %v103_v21 }
  0xe3   :  { %509 = vmatmul.mubr.msk.bf16.vlgmr.msra.gmra.mrb[0].mxu1 %vm145_vm2, %v105_v23 }
  0xe4   :  { %540 = vmatprep.mubr.msk.bf16.mxu1 %vm600_vm0, %v599_v1  ;;  %533 = vmatpush3.bf16.msra.mxu1 %v563_v27 }
  0xe5   :  { %534 = vmatprep.subr.bf16.mxu1 %v599_v1 }
  0xe8   :  { %535 = vmatpush3.bf16.msra.mxu1 %v564_v40 }
  0xe9   :  { %536 = vmatprep.subr.bf16.mxu1 %v599_v1 }
  0xec   :  { %537 = vmatpush3.bf16.msra.mxu1 %v565_v41 }
  0xed   :  { %538 = vmatprep.subr.bf16.mxu1 %v599_v1 }
  0xf0   :  { %539 = vmatpush3.bf16.msra.mxu1 %v566_v42 }
 0x1b6   :  { %v183_v29 = vpop.f32.mrb[0].mxu1 }
 0x1b7   :  { %v184_v30 = vadd.f32 %v443_v28, %v183_v29  ;;  %v510_v31 = vpop.f32.mrb[1].mxu1 }
 0x1b8   :  { %v186_v32 = vpop.f32.mrb[2].mxu1 }
 0x1b9   :  { %v190_v33 = vmul.f32 0.01, %v184_v30  ;;  %v187_v34 = vadd.f32 %v443_v28, %v186_v32  ;;  %v511_v35 = vpop.f32.mrb[3].mxu1 }
 0x1bb   :  { %v191_v36 = vmul.f32 0.01, %v187_v34  ;;  %v192_v37 = vmax.f32 %v184_v30, %v190_v33 }
 0x1bd   :  { %v193_v38 = vmax.f32 %v187_v34, %v191_v36 }
 0x1bf   :  { %v194_v39 = vpack.c.bf16 %v193_v38, %v192_v37 }
 0x1c1   :  { %529 = vmatmul.mubr.bf16.vlgmr.msra.gmra.mrb[4].mxu0 %v194_v39 }
 0x294   :  { %v300_v44 = vpop.f32.mrb[4].mxu0 }
 0x295   :  { %v301_v45 = vadd.f32 %v449_v43, %v300_v44  ;;  %v530_v46 = vpop.f32.mrb[5].mxu0 }
 0x296   :  { %v303_v47 = vpop.f32.mrb[6].mxu0 }
 0x297   :  { %v307_v48 = vmul.f32 0.01, %v301_v45  ;;  %v304_v49 = vadd.f32 %v449_v43, %v303_v47  ;;  %v531_v50 = vpop.f32.mrb[7].mxu0 }
 0x299   :  { %v308_v51 = vmul.f32 0.01, %v304_v49  ;;  %v309_v52 = vmax.f32 %v301_v45, %v307_v48 }
 0x29b   :  { %v310_v53 = vmax.f32 %v304_v49, %v308_v51 }
 0x29d   :  { %v311_v54 = vpack.c.bf16 %v310_v53, %v309_v52 }
 0x29f   :  { %541 = vmatmul.mubr.msk.bf16.vlgmr.msra.gmra.mrb[4].mxu1 %vm145_vm2, %v311_v54 }
 0x372   :  { %v388_v56 = vpop.f32.mrb[4].mxu1 }
 0x373   :  { %v389_v57 = vadd.f32 %v458_v55, %v388_v56  ;;  %v542_v58 = vpop.f32.mrb[5].mxu1 }
 0x374   :  { %v391_v59 = vpop.f32.mrb[6].mxu1 }
 0x375   :  { %395 = vmax.xlane.f32.xlu0 %v389_v57  ;;  %v543_v60 = vpop.f32.mrb[7].mxu1  ;;  %v392_v61 = vadd.f32 %v458_v55, %v391_v59 }
 0x379   :  { %397 = vmax.xlane.f32.xlu0 %v392_v61 }
 0x402   :  { %v396_v62 = vpop.xlane.xlu0 %395 }
 0x403   :  { %v399_v63 = vsub.f32 %v389_v57, %v396_v62 }
 0x405   :  { %v401_v0 = vmul.f32 1.442695, %v399_v63 }
 0x406   :  { %v398_v1 = vpop.xlane.xlu0 %397 }
 0x407   :  { %567 = vpow2.f32 %v401_v0  ;;  %v400_v2 = vsub.f32 %v392_v61, %v398_v1 }
 0x409   :  { %v403_v3 = vmul.f32 1.442695, %v400_v2 }
 0x40b   :  { %569 = vpow2.f32 %v403_v3 }
 0x411   :  { %v568_v4 = vpop.eup %567 }
 0x412   :  { %405 = vadd.xlane.f32.xlu1 %v568_v4 }
 0x415   :  { %v570_v5 = vpop.eup %569 }
 0x416   :  { %407 = vadd.xlane.f32.xlu1 %v570_v5 }
 0x49f   :  { %v406_v6 = vpop.xlane.xlu1 %405 }
 0x4a0   :  { %571 = vrcp.f32 %v406_v6 }
 0x4a3   :  { %v408_v7 = vpop.xlane.xlu1 %407 }
 0x4a4   :  { %573 = vrcp.f32 %v408_v7 }
 0x4aa   :  { %v572_v8 = vpop.eup %571 }
 0x4ab   :  { %v410_v10 = vmul.f32 %v572_v8, %v568_v4 }
 0x4ae   :  { %v574_v9 = vpop.eup %573 }
 0x4af   :  { %v412_v11 = vmul.f32 %v574_v9, %v570_v5 }
 0x4b1   :  { %v471_v12 = vpack.c.bf16 %v412_v11, %v410_v10 }
 0x4b3   :  { %472 = vst [vmem:[#allocation2] sm:$0xff] %v471_v12  }
 0x4b4   :  { %586 = shalt.err (!%p583_p4)
}
 0x4b5   :  { %s587_s25 = scalar_lea.hbm %s768_s9, 128 }
 0x4b6   :  { %p588_p5 = scmp.ne.s32.totalorder %s768_s9, %s587_s25  ;;  %p591_p6 = scmp.lt.u32.totalorder %s587_s25, %s768_s9 }
 0x4b8   :  { %p593_p7 = pnand %p591_p6, %p588_p5 }
 0x4ba   :  { %596 = shalt.err (!%p593_p7)
}
 0x4bb   :  { %s602_s30 = smov 64   ;;  %s603_s10 = smov 4  }
 0x4bc   :  { %434 = dma.vmem_to_hbm [thread:$0]  %s429_s8, 128, %s768_s9, [#allocation3], %s602_s30, %s602_s30, %s603_s10  }
 0x4bd   :  { %597 = dma.done.wait [#allocation3], 128  }
 0x4be   :  { %598 = vsyncadd [#allocation3], 4294967168 }
 0x4bf   :  { %438 = vsyncpa [#allocation3], 1 }

</bundles_post_ra>
